<compile_context>
chip_gen: v7x
topology: tpu7x:2x2x1
jax: 0.10.0
libtpu: 0.0.40
codegen_flags: <defaults>
</compile_context>

<pallas_src>
import jax
import jax.numpy as jnp
from jax.experimental import pallas as pl
from jax.experimental.pallas import tpu as pltpu


def _round_up(n, m):
    return ((n + m - 1) // m) * m


def rnn_fc_fused_kernel(x_ref, wih_ref, whh_ref, b_ref, wfc_ref, bfc_ref,
                        out_ref, xw_ref):
    """Whole-sequence tanh-RNN + final Linear, single invocation.

    x_ref  : (S*Bp, I)   bf16, time-major inputs (row block t = timestep t)
    wih_ref: (I, Hp)     bf16, W_ih^T (zero padded on H)
    whh_ref: (Hp, Hp)    bf16, W_hh^T (zero padded)
    b_ref  : (1, Hp)     f32,  b_ih + b_hh (zero padded)
    wfc_ref: (Hp, Lp)    bf16, W_fc^T (zero padded)
    bfc_ref: (1, Lp)     f32,  b_fc (zero padded)
    out_ref: (Bp, Lp)    f32,  logits for the last timestep
    xw_ref : (S*Bp, Hp)  f32 VMEM scratch: hoisted input projection + bias
    """
    bp = out_ref.shape[0]
    seq = x_ref.shape[0] // bp
    hp = whh_ref.shape[0]

    # (1) Hoist the input projection out of the recurrence: one lane-dense
    #     (S*Bp, I) @ (I, Hp) bf16 MXU matmul (f32 accumulation) + f32 bias
    #     covers every timestep.  The short contraction (I=16) is padded by
    #     the MXU for free — no need to zero-pad x in HBM.
    xw_ref[...] = (jnp.dot(x_ref[...], wih_ref[...],
                           preferred_element_type=jnp.float32)
                   + b_ref[...])

    # (2) Sequential recurrence (inherently serial over time):
    #     h_t = tanh(xw_t + h_{t-1} @ W_hh^T)
    #     W_hh^T is loaded once (bf16, 8 packed vregs at Hp=128) and reused.
    whh = whh_ref[...]

    def step(t, h):
        off = pl.multiple_of(t * bp, bp)        # sublane-aligned dynamic slice
        xw_t = xw_ref[pl.ds(off, bp), :]        # (Bp, Hp) f32 for timestep t
        pre = xw_t + jnp.dot(h.astype(jnp.bfloat16), whh,
                             preferred_element_type=jnp.float32)
        return jnp.tanh(pre)                    # tanh/adds kept in f32 (VPU/EUP)

    h_last = jax.lax.fori_loop(0, seq, step,
                               jnp.zeros((bp, hp), jnp.float32),
                               unroll=min(seq, 8))

    # (3) Final Linear on the last hidden state only (outside the time loop);
    #     output slab is lane-dense (Bp, Lp multiple of 128) -> unmasked vst.
    out_ref[...] = (jnp.dot(h_last.astype(jnp.bfloat16), wfc_ref[...],
                            preferred_element_type=jnp.float32)
                    + bfc_ref[...])


@jax.jit
def face_rnn_forward(x, w_ih, w_hh, b_ih, b_hh, w_fc, b_fc):
    """x: (B, S, I) float32, batch_first (torch convention). Returns (B, L) f32."""
    B, S, I = x.shape
    H = w_ih.shape[0]
    L = w_fc.shape[0]

    Bp = _round_up(B, 8)       # sublane alignment for the batch rows
    Hp = _round_up(H, 128)     # lane alignment for hidden
    Lp = _round_up(L, 128)     # lane alignment for logits

    # Lay x out time-major as a single 2D slab (S*Bp, I), padding only the
    # batch rows (feature dim stays I).  Cast to bf16 for the MXU / DMA.
    x_tm = jnp.transpose(x, (1, 0, 2))                          # (S, B, I)
    x_p = jnp.zeros((S, Bp, I), jnp.float32).at[:, :B, :].set(x_tm)
    x_2d = x_p.reshape(S * Bp, I).astype(jnp.bfloat16)

    # Zero-padded, transposed bf16 weights.  Zero padding keeps padded hidden
    # columns exactly zero through the recurrence (tanh(0) = 0); padded batch
    # rows carry garbage but are sliced off at the end.  Biases stay f32.
    wih_p = jnp.zeros((I, Hp), jnp.bfloat16).at[:, :H].set(
        w_ih.T.astype(jnp.bfloat16))
    whh_p = jnp.zeros((Hp, Hp), jnp.bfloat16).at[:H, :H].set(
        w_hh.T.astype(jnp.bfloat16))
    b_p = jnp.zeros((1, Hp), jnp.float32).at[0, :H].set(b_ih + b_hh)
    wfc_p = jnp.zeros((Hp, Lp), jnp.bfloat16).at[:H, :L].set(
        w_fc.T.astype(jnp.bfloat16))
    bfc_p = jnp.zeros((1, Lp), jnp.float32).at[0, :L].set(b_fc)

    out_p = pl.pallas_call(
        rnn_fc_fused_kernel,
        out_shape=jax.ShapeDtypeStruct((Bp, Lp), jnp.float32),
        in_specs=[pl.BlockSpec(memory_space=pltpu.MemorySpace.VMEM)] * 6,
        out_specs=pl.BlockSpec(memory_space=pltpu.MemorySpace.VMEM),
        scratch_shapes=[pltpu.VMEM((S * Bp, Hp), jnp.float32)],
    )(x_2d, wih_p, whh_p, b_p, wfc_p, bfc_p)

    return out_p[:B, :L]


def face_rnn_reference(x, w_ih, w_hh, b_ih, b_hh, w_fc, b_fc):
    """Pure-JAX f32 reference matching torch nn.RNN(batch_first=True) + Linear."""
    B, S, I = x.shape
    H = w_ih.shape[0]
    h = jnp.zeros((B, H), jnp.float32)
    for t in range(S):
        h = jnp.tanh(x[:, t, :] @ w_ih.T + b_ih + h @ w_hh.T + b_hh)
    return h @ w_fc.T + b_fc


if __name__ == "__main__":
    # Small shapes consistent with the module's forward:
    # input (B, seq, input_size), hidden_size, label_features
    B, S, I, H, L = 2, 8, 16, 32, 4

    key = jax.random.PRNGKey(0)
    kx, k1, k2, k3, k4, k5, k6 = jax.random.split(key, 7)

    # PyTorch-style uniform(-1/sqrt(H), 1/sqrt(H)) init, deterministic.
    bound = 1.0 / jnp.sqrt(jnp.float32(H))
    x = jax.random.normal(kx, (B, S, I), jnp.float32)
    w_ih = jax.random.uniform(k1, (H, I), jnp.float32, -bound, bound)
    w_hh = jax.random.uniform(k2, (H, H), jnp.float32, -bound, bound)
    b_ih = jax.random.uniform(k3, (H,), jnp.float32, -bound, bound)
    b_hh = jax.random.uniform(k4, (H,), jnp.float32, -bound, bound)
    w_fc = jax.random.uniform(k5, (L, H), jnp.float32, -bound, bound)
    b_fc = jax.random.uniform(k6, (L,), jnp.float32, -bound, bound)

    out = face_rnn_forward(x, w_ih, w_hh, b_ih, b_hh, w_fc, b_fc)
    out = jax.block_until_ready(out)

    ref = face_rnn_reference(x, w_ih, w_hh, b_ih, b_hh, w_fc, b_fc)
    assert out.shape == (B, L)
    # bf16 MXU operands (f32 accumulation) vs the pure-f32 reference.
    assert jnp.allclose(out, ref, atol=2e-2, rtol=2e-2), (out, ref)

    print("KERNEL_OK")
</pallas_src>

<mosaic_0001>
module attributes {stable_mosaic.version = 11 : i64} {
  func.func @rnn_fc_fused_kernel(%arg0: memref<64x16xbf16, #tpu.memory_space<vmem>>, %arg1: memref<16x128xbf16, #tpu.memory_space<vmem>>, %arg2: memref<128x128xbf16, #tpu.memory_space<vmem>>, %arg3: memref<1x128xf32, #tpu.memory_space<vmem>>, %arg4: memref<128x128xbf16, #tpu.memory_space<vmem>>, %arg5: memref<1x128xf32, #tpu.memory_space<vmem>>, %arg6: memref<8x128xf32, #tpu.memory_space<vmem>>, %arg7: memref<64x128xf32, #tpu.memory_space<vmem>>) attributes {dimension_semantics = [], scalar_prefetch = 0 : i64, scratch_operands = 1 : i64, tpu.core_type = #tpu.core_type<tc>} {
    %c0 = arith.constant 0 : index
    %c0_0 = arith.constant 0 : index
    %0 = vector.load %arg0[%c0, %c0_0] : memref<64x16xbf16, #tpu.memory_space<vmem>>, vector<64x16xbf16>
    %c0_1 = arith.constant 0 : index
    %c0_2 = arith.constant 0 : index
    %1 = vector.load %arg1[%c0_1, %c0_2] : memref<16x128xbf16, #tpu.memory_space<vmem>>, vector<16x128xbf16>
    %cst = arith.constant dense<0.000000e+00> : vector<64x128xf32>
    %2 = tpu.matmul %0, %1, %cst {dimension_numbers = #tpu.dot_dimension_numbers<[1], [0], [0], [1], [0, 0, 1, 1], [], []>} : vector<64x16xbf16>, vector<16x128xbf16>, vector<64x128xf32> -> vector<64x128xf32>
    %c0_3 = arith.constant 0 : index
    %c0_4 = arith.constant 0 : index
    %3 = vector.load %arg3[%c0_3, %c0_4] : memref<1x128xf32, #tpu.memory_space<vmem>>, vector<1x128xf32>
    %4 = vector.broadcast %3 : vector<1x128xf32> to vector<64x128xf32>
    %5 = arith.addf %2, %4 : vector<64x128xf32>
    %c0_5 = arith.constant 0 : index
    %c0_6 = arith.constant 0 : index
    %6 = vector.load %arg7[%c0_5, %c0_6] : memref<64x128xf32, #tpu.memory_space<vmem>>, vector<64x128xf32>
    tpu.vector_store %arg7[%c0_5, %c0_6], %5 {strides = array<i32>} : memref<64x128xf32, #tpu.memory_space<vmem>>, vector<64x128xf32>,
    %c0_7 = arith.constant 0 : index
    %c0_8 = arith.constant 0 : index
    %7 = vector.load %arg2[%c0_7, %c0_8] : memref<128x128xbf16, #tpu.memory_space<vmem>>, vector<128x128xbf16>
    %cst_9 = arith.constant 0.000000e+00 : f32
    %8 = vector.broadcast %cst_9 : f32 to vector<8x128xf32>
    %c0_i32 = arith.constant 0 : i32
    %c8_i32 = arith.constant 8 : i32
    %9 = arith.muli %c0_i32, %c8_i32 : i32
    %10 = tpu.assume_multiple %9, 8 : i32
    %11 = arith.index_cast %10 : i32 to index
    %c0_10 = arith.constant 0 : index
    %12 = vector.load %arg7[%11, %c0_10] : memref<64x128xf32, #tpu.memory_space<vmem>>, vector<8x128xf32>
    %13 = arith.truncf %8 : vector<8x128xf32> to vector<8x128xbf16>
    %cst_11 = arith.constant dense<0.000000e+00> : vector<8x128xf32>
    %14 = tpu.matmul %13, %7, %cst_11 {dimension_numbers = #tpu.dot_dimension_numbers<[1], [0], [0], [1], [0, 0, 1, 1], [], []>} : vector<8x128xbf16>, vector<128x128xbf16>, vector<8x128xf32> -> vector<8x128xf32>
    %15 = arith.addf %12, %14 : vector<8x128xf32>
    %16 = math.tanh %15 : vector<8x128xf32>
    %c1_i32 = arith.constant 1 : i32
    %c8_i32_12 = arith.constant 8 : i32
    %17 = arith.muli %c1_i32, %c8_i32_12 : i32
    %18 = tpu.assume_multiple %17, 8 : i32
    %19 = arith.index_cast %18 : i32 to index
    %c0_13 = arith.constant 0 : index
    %20 = vector.load %arg7[%19, %c0_13] : memref<64x128xf32, #tpu.memory_space<vmem>>, vector<8x128xf32>
    %21 = arith.truncf %16 : vector<8x128xf32> to vector<8x128xbf16>
    %cst_14 = arith.constant dense<0.000000e+00> : vector<8x128xf32>
    %22 = tpu.matmul %21, %7, %cst_14 {dimension_numbers = #tpu.dot_dimension_numbers<[1], [0], [0], [1], [0, 0, 1, 1], [], []>} : vector<8x128xbf16>, vector<128x128xbf16>, vector<8x128xf32> -> vector<8x128xf32>
    %23 = arith.addf %20, %22 : vector<8x128xf32>
    %24 = math.tanh %23 : vector<8x128xf32>
    %c2_i32 = arith.constant 2 : i32
    %c8_i32_15 = arith.constant 8 : i32
    %25 = arith.muli %c2_i32, %c8_i32_15 : i32
    %26 = tpu.assume_multiple %25, 8 : i32
    %27 = arith.index_cast %26 : i32 to index
    %c0_16 = arith.constant 0 : index
    %28 = vector.load %arg7[%27, %c0_16] : memref<64x128xf32, #tpu.memory_space<vmem>>, vector<8x128xf32>
    %29 = arith.truncf %24 : vector<8x128xf32> to vector<8x128xbf16>
    %cst_17 = arith.constant dense<0.000000e+00> : vector<8x128xf32>
    %30 = tpu.matmul %29, %7, %cst_17 {dimension_numbers = #tpu.dot_dimension_numbers<[1], [0], [0], [1], [0, 0, 1, 1], [], []>} : vector<8x128xbf16>, vector<128x128xbf16>, vector<8x128xf32> -> vector<8x128xf32>
    %31 = arith.addf %28, %30 : vector<8x128xf32>
    %32 = math.tanh %31 : vector<8x128xf32>
    %c3_i32 = arith.constant 3 : i32
    %c8_i32_18 = arith.constant 8 : i32
    %33 = arith.muli %c3_i32, %c8_i32_18 : i32
    %34 = tpu.assume_multiple %33, 8 : i32
    %35 = arith.index_cast %34 : i32 to index
    %c0_19 = arith.constant 0 : index
    %36 = vector.load %arg7[%35, %c0_19] : memref<64x128xf32, #tpu.memory_space<vmem>>, vector<8x128xf32>
    %37 = arith.truncf %32 : vector<8x128xf32> to vector<8x128xbf16>
    %cst_20 = arith.constant dense<0.000000e+00> : vector<8x128xf32>
    %38 = tpu.matmul %37, %7, %cst_20 {dimension_numbers = #tpu.dot_dimension_numbers<[1], [0], [0], [1], [0, 0, 1, 1], [], []>} : vector<8x128xbf16>, vector<128x128xbf16>, vector<8x128xf32> -> vector<8x128xf32>
    %39 = arith.addf %36, %38 : vector<8x128xf32>
    %40 = math.tanh %39 : vector<8x128xf32>
    %c4_i32 = arith.constant 4 : i32
    %c8_i32_21 = arith.constant 8 : i32
    %41 = arith.muli %c4_i32, %c8_i32_21 : i32
    %42 = tpu.assume_multiple %41, 8 : i32
    %43 = arith.index_cast %42 : i32 to index
    %c0_22 = arith.constant 0 : index
    %44 = vector.load %arg7[%43, %c0_22] : memref<64x128xf32, #tpu.memory_space<vmem>>, vector<8x128xf32>
    %45 = arith.truncf %40 : vector<8x128xf32> to vector<8x128xbf16>
    %cst_23 = arith.constant dense<0.000000e+00> : vector<8x128xf32>
    %46 = tpu.matmul %45, %7, %cst_23 {dimension_numbers = #tpu.dot_dimension_numbers<[1], [0], [0], [1], [0, 0, 1, 1], [], []>} : vector<8x128xbf16>, vector<128x128xbf16>, vector<8x128xf32> -> vector<8x128xf32>
    %47 = arith.addf %44, %46 : vector<8x128xf32>
    %48 = math.tanh %47 : vector<8x128xf32>
    %c5_i32 = arith.constant 5 : i32
    %c8_i32_24 = arith.constant 8 : i32
    %49 = arith.muli %c5_i32, %c8_i32_24 : i32
    %50 = tpu.assume_multiple %49, 8 : i32
    %51 = arith.index_cast %50 : i32 to index
    %c0_25 = arith.constant 0 : index
    %52 = vector.load %arg7[%51, %c0_25] : memref<64x128xf32, #tpu.memory_space<vmem>>, vector<8x128xf32>
    %53 = arith.truncf %48 : vector<8x128xf32> to vector<8x128xbf16>
    %cst_26 = arith.constant dense<0.000000e+00> : vector<8x128xf32>
    %54 = tpu.matmul %53, %7, %cst_26 {dimension_numbers = #tpu.dot_dimension_numbers<[1], [0], [0], [1], [0, 0, 1, 1], [], []>} : vector<8x128xbf16>, vector<128x128xbf16>, vector<8x128xf32> -> vector<8x128xf32>
    %55 = arith.addf %52, %54 : vector<8x128xf32>
    %56 = math.tanh %55 : vector<8x128xf32>
    %c6_i32 = arith.constant 6 : i32
    %c8_i32_27 = arith.constant 8 : i32
    %57 = arith.muli %c6_i32, %c8_i32_27 : i32
    %58 = tpu.assume_multiple %57, 8 : i32
    %59 = arith.index_cast %58 : i32 to index
    %c0_28 = arith.constant 0 : index
    %60 = vector.load %arg7[%59, %c0_28] : memref<64x128xf32, #tpu.memory_space<vmem>>, vector<8x128xf32>
    %61 = arith.truncf %56 : vector<8x128xf32> to vector<8x128xbf16>
    %cst_29 = arith.constant dense<0.000000e+00> : vector<8x128xf32>
    %62 = tpu.matmul %61, %7, %cst_29 {dimension_numbers = #tpu.dot_dimension_numbers<[1], [0], [0], [1], [0, 0, 1, 1], [], []>} : vector<8x128xbf16>, vector<128x128xbf16>, vector<8x128xf32> -> vector<8x128xf32>
    %63 = arith.addf %60, %62 : vector<8x128xf32>
    %64 = math.tanh %63 : vector<8x128xf32>
    %c7_i32 = arith.constant 7 : i32
    %c8_i32_30 = arith.constant 8 : i32
    %65 = arith.muli %c7_i32, %c8_i32_30 : i32
    %66 = tpu.assume_multiple %65, 8 : i32
    %67 = arith.index_cast %66 : i32 to index
    %c0_31 = arith.constant 0 : index
    %68 = vector.load %arg7[%67, %c0_31] : memref<64x128xf32, #tpu.memory_space<vmem>>, vector<8x128xf32>
    %69 = arith.truncf %64 : vector<8x128xf32> to vector<8x128xbf16>
    %cst_32 = arith.constant dense<0.000000e+00> : vector<8x128xf32>
    %70 = tpu.matmul %69, %7, %cst_32 {dimension_numbers = #tpu.dot_dimension_numbers<[1], [0], [0], [1], [0, 0, 1, 1], [], []>} : vector<8x128xbf16>, vector<128x128xbf16>, vector<8x128xf32> -> vector<8x128xf32>
    %71 = arith.addf %68, %70 : vector<8x128xf32>
    %72 = math.tanh %71 : vector<8x128xf32>
    %c8_i32_33 = arith.constant 8 : i32
    %73 = arith.truncf %72 : vector<8x128xf32> to vector<8x128xbf16>
    %c0_34 = arith.constant 0 : index
    %c0_35 = arith.constant 0 : index
    %74 = vector.load %arg4[%c0_34, %c0_35] : memref<128x128xbf16, #tpu.memory_space<vmem>>, vector<128x128xbf16>
    %cst_36 = arith.constant dense<0.000000e+00> : vector<8x128xf32>
    %75 = tpu.matmul %73, %74, %cst_36 {dimension_numbers = #tpu.dot_dimension_numbers<[1], [0], [0], [1], [0, 0, 1, 1], [], []>} : vector<8x128xbf16>, vector<128x128xbf16>, vector<8x128xf32> -> vector<8x128xf32>
    %c0_37 = arith.constant 0 : index
    %c0_38 = arith.constant 0 : index
    %76 = vector.load %arg5[%c0_37, %c0_38] : memref<1x128xf32, #tpu.memory_space<vmem>>, vector<1x128xf32>
    %77 = vector.broadcast %76 : vector<1x128xf32> to vector<8x128xf32>
    %78 = arith.addf %75, %77 : vector<8x128xf32>
    %c0_39 = arith.constant 0 : index
    %c0_40 = arith.constant 0 : index
    %79 = vector.load %arg6[%c0_39, %c0_40] : memref<8x128xf32, #tpu.memory_space<vmem>>, vector<8x128xf32>
    tpu.vector_store %arg6[%c0_39, %c0_40], %78 {strides = array<i32>} : memref<8x128xf32, #tpu.memory_space<vmem>>, vector<8x128xf32>,
    return
  }
}

</mosaic_0001>

<bundles_post_ra>
// kernel: face_rnn_forward.1
= control target key start
LH: loop header
LB: loop body
LE: loop exit
PB: predicated region body
PF: predicated region fallthrough
CT: control target
= control target key end

     0   :  { %v1035_v0 = vmov 0.0   ;;  %vm1036_vm0 = vmmov 0   ;;  %vm67_vm1 = vcmask 130048   ;;  %v1037_v12 = vmov 0   ;;  %s1347_s2 = inlined_call_operand.vmem [shape: bf16[128,128], index: 2, kind: input, shape index: {}]   ;;  %s1348_s1 = inlined_call_operand.vmem [shape: bf16[16,128], index: 1, kind: input, shape index: {}]   ;;  %s1349_s0 = inlined_call_operand.vmem [shape: bf16[64,16], index: 0, kind: input, shape index: {}]   ;;  %s1350_s3 = inlined_call_operand.vmem [shape: f32[1,128], index: 3, kind: input, shape index: {}]   ;;  %s1351_s4 = inlined_call_operand.vmem [shape: bf16[128,128], index: 4, kind: input, shape index: {}]   ;;  %s1352_s5 = inlined_call_operand.vmem [shape: f32[1,128], index: 5, kind: input, shape index: {}]   ;;  %s1353_s6 = inlined_call_operand.vmem [shape: f32[8,128], index: 6, kind: output, shape index: {}]  }
   0x1   :  { %815 = vmatprep.subr.bf16.mxu1 %v1035_v0  ;;  %v1077_v1 = vld [vmem:[%s1347_s2] sm:$0xff]   ;;  %831 = vmatprep.mubr.msk.bf16.mxu1 %vm1036_vm0, %v1035_v0  ;;  %v1085_v2 = vld [vmem:[%s1347_s2 + $0x8] sm:$0xff]   ;;  %v1091_v3 = vld [vmem:[%s1347_s2 + $0x10] sm:$0xff]  }
   0x2   :  { %816 = vmatpush3.bf16.msra.mxu1 %v1077_v1  ;;  %v1004_v4 = vld [vmem:[%s1348_s1] sm:$0xff]   ;;  %v1007_v6 = vld [vmem:[%s1349_s0 + $0x8] sm:$0xff]   ;;  %v1109_v7 = vld [vmem:[%s1347_s2 + $0x18] sm:$0xff]  }
   0x3   :  { %817 = vmatprep.subr.bf16.mxu1 %v1035_v0  ;;  %v1005_v5 = vld [vmem:[%s1349_s0] sm:$0xff]   ;;  %805 = vmatprep.subr.bf16.mxu0 %v1004_v4  ;;  %v1128_v9 = vld [vmem:[%s1347_s2 + $0x28] sm:$0xff]   ;;  %v1137_v10 = vld [vmem:[%s1347_s2 + $0x30] sm:$0xff]  }
   0x4   :  { %806 = vmatpush3.bf16.msra.mxu0 %v1004_v4  ;;  %807 = vmatprep.mubr.msk.bf16.mxu0 %vm67_vm1, %v1005_v5  ;;  %v1119_v8 = vld [vmem:[%s1347_s2 + $0x20] sm:$0xff]   ;;  %v1146_v11 = vld [vmem:[%s1347_s2 + $0x38] sm:$0xff]   ;;  %v1009_v13 = vld [vmem:[%s1349_s0 + $0x10] sm:$0xff]  }
   0x5   :  { %835 = vmatprep.subr.bf16.mxu0 %v1035_v0  ;;  %v1010_v14 = vld [vmem:[%s1349_s0 + $0x18] sm:$0xff]   ;;  %v1195_v19 = vld [vmem:[%s1350_s3] ss:$0 sm:$0xff] }
   0x6   :  { %818 = vmatpush3.bf16.msra.mxu1 %v1085_v2 }
   0x7   :  { %819 = vmatprep.subr.bf16.mxu1 %v1035_v0  ;;  %808 = vmatmul.mubr.msk.bf16.vlgmr.msra.gmra.mrb[0].mxu0 %vm67_vm1, %v1007_v6 }
   0x8   :  { %836 = vmatpush3.bf16.msra.mxu0 %v1077_v1  ;;  %811 = vmatprep.mubr.msk.bf16.mxu0 %vm67_vm1, %v1009_v13 }
   0x9   :  { %837 = vmatprep.subr.bf16.mxu0 %v1035_v0 }
   0xa   :  { %820 = vmatpush3.bf16.msra.mxu1 %v1091_v3 }
   0xb   :  { %821 = vmatprep.subr.bf16.mxu1 %v1035_v0 }
   0xc   :  { %838 = vmatpush3.bf16.msra.mxu0 %v1085_v2 }
   0xd   :  { %839 = vmatprep.subr.bf16.mxu0 %v1035_v0 }
   0xe   :  { %822 = vmatpush3.bf16.msra.mxu1 %v1109_v7 }
   0xf   :  { %823 = vmatprep.subr.bf16.mxu1 %v1035_v0  ;;  %812 = vmatmul.mubr.msk.bf16.gmra.mrb[4].mxu0 %vm67_vm1, %v1010_v14 }
  0x10   :  { %840 = vmatpush3.bf16.msra.mxu0 %v1091_v3  ;;  %851 = vmatprep.mubr.msk.bf16.mxu0 %vm1036_vm0, %v1035_v0 }
  0x11   :  { %841 = vmatprep.subr.bf16.mxu0 %v1035_v0 }
  0x12   :  { %824 = vmatpush3.bf16.msra.mxu1 %v1119_v8 }
  0x13   :  { %825 = vmatprep.subr.bf16.mxu1 %v1035_v0 }
  0x14   :  { %842 = vmatpush3.bf16.msra.mxu0 %v1109_v7 }
  0x15   :  { %843 = vmatprep.subr.bf16.mxu0 %v1035_v0 }
  0x16   :  { %826 = vmatpush3.bf16.msra.mxu1 %v1128_v9 }
  0x17   :  { %827 = vmatprep.subr.bf16.mxu1 %v1035_v0 }
  0x18   :  { %844 = vmatpush3.bf16.msra.mxu0 %v1119_v8 }
  0x19   :  { %845 = vmatprep.subr.bf16.mxu0 %v1035_v0 }
  0x1a   :  { %828 = vmatpush3.bf16.msra.mxu1 %v1137_v10 }
  0x1b   :  { %829 = vmatprep.subr.bf16.mxu1 %v1035_v0 }
  0x1c   :  { %846 = vmatpush3.bf16.msra.mxu0 %v1128_v9 }
  0x1d   :  { %847 = vmatprep.subr.bf16.mxu0 %v1035_v0 }
  0x1e   :  { %830 = vmatpush3.bf16.msra.mxu1 %v1146_v11 }
  0x1f   :  { %855 = vmatprep.subr.bf16.mxu1 %v1035_v0 }
  0x20   :  { %848 = vmatpush3.bf16.msra.mxu0 %v1137_v10 }
  0x21   :  { %832 = vmatmul.mubr.bf16.vlgmr.msra.gmra.mrb[0].mxu1 %v1037_v12  ;;  %849 = vmatprep.subr.bf16.mxu0 %v1035_v0  ;;  %v1014_v12 = vld [vmem:[%s1351_s4 + $0x18] sm:$0xff]  }
  0x22   :  { %856 = vmatpush3.bf16.msra.mxu1 %v1077_v1  ;;  %871 = vmatprep.mubr.msk.bf16.mxu1 %vm1036_vm0, %v1035_v0 }
  0x23   :  { %857 = vmatprep.subr.bf16.mxu1 %v1035_v0 }
  0x24   :  { %850 = vmatpush3.bf16.msra.mxu0 %v1146_v11 }
  0x25   :  { %875 = vmatprep.subr.bf16.mxu0 %v1035_v0 }
  0x26   :  { %858 = vmatpush3.bf16.msra.mxu1 %v1085_v2 }
  0x27   :  { %859 = vmatprep.subr.bf16.mxu1 %v1035_v0 }
  0x2a   :  { %860 = vmatpush3.bf16.msra.mxu1 %v1091_v3 }
  0x2b   :  { %861 = vmatprep.subr.bf16.mxu1 %v1035_v0 }
  0x2e   :  { %862 = vmatpush3.bf16.msra.mxu1 %v1109_v7 }
  0x2f   :  { %863 = vmatprep.subr.bf16.mxu1 %v1035_v0 }
  0x32   :  { %864 = vmatpush3.bf16.msra.mxu1 %v1119_v8 }
  0x33   :  { %865 = vmatprep.subr.bf16.mxu1 %v1035_v0 }
  0x36   :  { %866 = vmatpush3.bf16.msra.mxu1 %v1128_v9 }
  0x37   :  { %867 = vmatprep.subr.bf16.mxu1 %v1035_v0 }
  0x3a   :  { %868 = vmatpush3.bf16.msra.mxu1 %v1137_v10 }
  0x3b   :  { %869 = vmatprep.subr.bf16.mxu1 %v1035_v0 }
  0x3e   :  { %870 = vmatpush3.bf16.msra.mxu1 %v1146_v11 }
  0x3f   :  { %895 = vmatprep.subr.bf16.mxu1 %v1035_v0 }
  0xda   :  { %v1188_v15 = vpop.f32.mrb[0].mxu0 }
  0xdb   :  { %v114_v16 = vpop.f32.mrb[1].mxu0  ;;  %v123_v40 = vadd.f32 %v1188_v15, %v1195_v19 }
  0xdc   :  { %v1190_v17 = vpop.f32.mrb[2].mxu0  ;;  %v115_v20 = vadd.f32 %v1195_v19, %v114_v16 }
  0xdd   :  { %v117_v18 = vpop.f32.mrb[3].mxu0  ;;  %v126_v48 = vadd.f32 %v1190_v17, %v1195_v19 }
  0xde   :  { %v118_v32 = vadd.f32 %v1195_v19, %v117_v18 }
  0xe2   :  { %v1216_v28 = vpop.f32.mrb[4].mxu0 }
  0xe3   :  { %v1218_v29 = vpop.f32.mrb[5].mxu0  ;;  %v139_v13 = vadd.f32 %v1216_v28, %v1195_v19 }
  0xe4   :  { %v1220_v30 = vpop.f32.mrb[6].mxu0  ;;  %v131_v56 = vadd.f32 %v1195_v19, %v1218_v29 }
  0xe5   :  { %v1222_v31 = vpop.f32.mrb[7].mxu0 }
  0xf4   :  { %v252_v21 = vpop.f32.mrb[0].mxu1 }
  0xf5   :  { %v258_v22 = vadd.f32 %v252_v21, %v115_v20  ;;  %v833_v23 = vpop.f32.mrb[1].mxu1 }
  0xf6   :  { %v255_v24 = vpop.f32.mrb[2].mxu1  ;;  %v1016_v23 = vld [vmem:[%s1351_s4 + $0x28] sm:$0xff]  }
  0xf7   :  { %1019 = vtanh.f32 %v258_v22  ;;  %v834_v25 = vpop.f32.mrb[3].mxu1  ;;  %v1015_v22 = vld [vmem:[%s1351_s4 + $0x20] sm:$0xff]   ;;  %v1017_v24 = vld [vmem:[%s1351_s4 + $0x30] sm:$0xff]  }
  0xf8   :  { %v1018_v25 = vld [vmem:[%s1351_s4 + $0x38] sm:$0xff]  }
 0x101   :  { %v1020_v26 = vpop.eup %1019 }
 0x102   :  { %v262_v27 = vpack.c.bf16 %v1020_v26, %v1020_v26  ;;  %v142_v26 = vadd.f32 %v1220_v30, %v1195_v19 }
 0x104   :  { %852 = vmatmul.mubr.bf16.vlgmr.msra.gmra.mrb[8].mxu0 %v262_v27 }
 0x105   :  { %876 = vmatpush3.bf16.msra.mxu0 %v1077_v1  ;;  %891 = vmatprep.mubr.msk.bf16.mxu0 %vm1036_vm0, %v1035_v0 }
 0x106   :  { %877 = vmatprep.subr.bf16.mxu0 %v1035_v0 }
 0x109   :  { %878 = vmatpush3.bf16.msra.mxu0 %v1085_v2 }
 0x10a   :  { %879 = vmatprep.subr.bf16.mxu0 %v1035_v0 }
 0x10d   :  { %880 = vmatpush3.bf16.msra.mxu0 %v1091_v3 }
 0x10e   :  { %881 = vmatprep.subr.bf16.mxu0 %v1035_v0 }
 0x111   :  { %882 = vmatpush3.bf16.msra.mxu0 %v1109_v7 }
 0x112   :  { %883 = vmatprep.subr.bf16.mxu0 %v1035_v0 }
 0x115   :  { %884 = vmatpush3.bf16.msra.mxu0 %v1119_v8 }
 0x116   :  { %885 = vmatprep.subr.bf16.mxu0 %v1035_v0 }
 0x119   :  { %886 = vmatpush3.bf16.msra.mxu0 %v1128_v9 }
 0x11a   :  { %887 = vmatprep.subr.bf16.mxu0 %v1035_v0 }
 0x11d   :  { %888 = vmatpush3.bf16.msra.mxu0 %v1137_v10 }
 0x11e   :  { %889 = vmatprep.subr.bf16.mxu0 %v1035_v0 }
 0x121   :  { %890 = vmatpush3.bf16.msra.mxu0 %v1146_v11 }
 0x122   :  { %915 = vmatprep.subr.bf16.mxu0 %v1035_v0 }
 0x1d7   :  { %v297_v33 = vpop.f32.mrb[8].mxu0 }
 0x1d8   :  { %v303_v34 = vadd.f32 %v297_v33, %v118_v32  ;;  %v853_v35 = vpop.f32.mrb[9].mxu0 }
 0x1d9   :  { %v300_v36 = vpop.f32.mrb[10].mxu0 }
 0x1da   :  { %1021 = vtanh.f32 %v303_v34  ;;  %v854_v37 = vpop.f32.mrb[11].mxu0 }
 0x1e4   :  { %v1022_v38 = vpop.eup %1021 }
 0x1e5   :  { %v307_v39 = vpack.c.bf16 %v1022_v38, %v1022_v38 }
 0x1e7   :  { %872 = vmatmul.mubr.bf16.vlgmr.msra.gmra.mrb[4].mxu1 %v307_v39 }
 0x1e8   :  { %896 = vmatpush3.bf16.msra.mxu1 %v1077_v1  ;;  %911 = vmatprep.mubr.msk.bf16.mxu1 %vm1036_vm0, %v1035_v0 }
 0x1e9   :  { %897 = vmatprep.subr.bf16.mxu1 %v1035_v0 }
 0x1ec   :  { %898 = vmatpush3.bf16.msra.mxu1 %v1085_v2 }
 0x1ed   :  { %899 = vmatprep.subr.bf16.mxu1 %v1035_v0 }
 0x1f0   :  { %900 = vmatpush3.bf16.msra.mxu1 %v1091_v3 }
 0x1f1   :  { %901 = vmatprep.subr.bf16.mxu1 %v1035_v0 }
 0x1f4   :  { %902 = vmatpush3.bf16.msra.mxu1 %v1109_v7 }
 0x1f5   :  { %903 = vmatprep.subr.bf16.mxu1 %v1035_v0 }
 0x1f8   :  { %904 = vmatpush3.bf16.msra.mxu1 %v1119_v8 }
 0x1f9   :  { %905 = vmatprep.subr.bf16.mxu1 %v1035_v0 }
 0x1fc   :  { %906 = vmatpush3.bf16.msra.mxu1 %v1128_v9 }
 0x1fd   :  { %907 = vmatprep.subr.bf16.mxu1 %v1035_v0 }
 0x200   :  { %908 = vmatpush3.bf16.msra.mxu1 %v1137_v10 }
 0x201   :  { %909 = vmatprep.subr.bf16.mxu1 %v1035_v0 }
 0x204   :  { %910 = vmatpush3.bf16.msra.mxu1 %v1146_v11 }
 0x205   :  { %935 = vmatprep.subr.bf16.mxu1 %v1035_v0 }
 0x2ba   :  { %v342_v41 = vpop.f32.mrb[4].mxu1 }
 0x2bb   :  { %v348_v42 = vadd.f32 %v342_v41, %v123_v40  ;;  %v873_v43 = vpop.f32.mrb[5].mxu1 }
 0x2bc   :  { %v345_v44 = vpop.f32.mrb[6].mxu1 }
 0x2bd   :  { %1023 = vtanh.f32 %v348_v42  ;;  %v874_v45 = vpop.f32.mrb[7].mxu1 }
 0x2c7   :  { %v1024_v46 = vpop.eup %1023 }
 0x2c8   :  { %v352_v47 = vpack.c.bf16 %v1024_v46, %v1024_v46 }
 0x2ca   :  { %892 = vmatmul.mubr.bf16.vlgmr.msra.gmra.mrb[12].mxu0 %v352_v47 }
 0x2cb   :  { %916 = vmatpush3.bf16.msra.mxu0 %v1077_v1  ;;  %931 = vmatprep.mubr.msk.bf16.mxu0 %vm1036_vm0, %v1035_v0 }
 0x2cc   :  { %917 = vmatprep.subr.bf16.mxu0 %v1035_v0 }
 0x2cf   :  { %918 = vmatpush3.bf16.msra.mxu0 %v1085_v2 }
 0x2d0   :  { %919 = vmatprep.subr.bf16.mxu0 %v1035_v0 }
 0x2d3   :  { %920 = vmatpush3.bf16.msra.mxu0 %v1091_v3 }
 0x2d4   :  { %921 = vmatprep.subr.bf16.mxu0 %v1035_v0 }
 0x2d7   :  { %922 = vmatpush3.bf16.msra.mxu0 %v1109_v7 }
 0x2d8   :  { %923 = vmatprep.subr.bf16.mxu0 %v1035_v0 }
 0x2db   :  { %924 = vmatpush3.bf16.msra.mxu0 %v1119_v8 }
 0x2dc   :  { %925 = vmatprep.subr.bf16.mxu0 %v1035_v0 }
 0x2df   :  { %926 = vmatpush3.bf16.msra.mxu0 %v1128_v9 }
 0x2e0   :  { %927 = vmatprep.subr.bf16.mxu0 %v1035_v0 }
 0x2e3   :  { %928 = vmatpush3.bf16.msra.mxu0 %v1137_v10 }
 0x2e4   :  { %929 = vmatprep.subr.bf16.mxu0 %v1035_v0 }
 0x2e7   :  { %930 = vmatpush3.bf16.msra.mxu0 %v1146_v11 }
 0x2e8   :  { %955 = vmatprep.subr.bf16.mxu0 %v1035_v0 }
 0x39d   :  { %v387_v49 = vpop.f32.mrb[12].mxu0 }
 0x39e   :  { %v393_v50 = vadd.f32 %v387_v49, %v126_v48  ;;  %v893_v51 = vpop.f32.mrb[13].mxu0 }
 0x39f   :  { %v390_v52 = vpop.f32.mrb[14].mxu0 }
 0x3a0   :  { %1025 = vtanh.f32 %v393_v50  ;;  %v894_v53 = vpop.f32.mrb[15].mxu0 }
 0x3aa   :  { %v1026_v54 = vpop.eup %1025 }
 0x3ab   :  { %v397_v55 = vpack.c.bf16 %v1026_v54, %v1026_v54 }
 0x3ad   :  { %912 = vmatmul.mubr.bf16.vlgmr.msra.gmra.mrb[8].mxu1 %v397_v55 }
 0x3ae   :  { %936 = vmatpush3.bf16.msra.mxu1 %v1077_v1  ;;  %951 = vmatprep.mubr.msk.bf16.mxu1 %vm1036_vm0, %v1035_v0 }
 0x3af   :  { %937 = vmatprep.subr.bf16.mxu1 %v1035_v0 }
 0x3b2   :  { %938 = vmatpush3.bf16.msra.mxu1 %v1085_v2 }
 0x3b3   :  { %939 = vmatprep.subr.bf16.mxu1 %v1035_v0 }
 0x3b6   :  { %940 = vmatpush3.bf16.msra.mxu1 %v1091_v3 }
 0x3b7   :  { %941 = vmatprep.subr.bf16.mxu1 %v1035_v0 }
 0x3ba   :  { %942 = vmatpush3.bf16.msra.mxu1 %v1109_v7 }
 0x3bb   :  { %943 = vmatprep.subr.bf16.mxu1 %v1035_v0 }
 0x3be   :  { %944 = vmatpush3.bf16.msra.mxu1 %v1119_v8 }
 0x3bf   :  { %945 = vmatprep.subr.bf16.mxu1 %v1035_v0 }
 0x3c2   :  { %946 = vmatpush3.bf16.msra.mxu1 %v1128_v9 }
 0x3c3   :  { %947 = vmatprep.subr.bf16.mxu1 %v1035_v0 }
 0x3c6   :  { %948 = vmatpush3.bf16.msra.mxu1 %v1137_v10 }
 0x3c7   :  { %949 = vmatprep.subr.bf16.mxu1 %v1035_v0 }
 0x3ca   :  { %950 = vmatpush3.bf16.msra.mxu1 %v1146_v11 }
 0x3cb   :  { %975 = vmatprep.subr.bf16.mxu1 %v1035_v0 }
 0x480   :  { %v432_v57 = vpop.f32.mrb[8].mxu1 }
 0x481   :  { %v438_v58 = vadd.f32 %v432_v57, %v131_v56  ;;  %v913_v59 = vpop.f32.mrb[9].mxu1 }
 0x482   :  { %v435_v60 = vpop.f32.mrb[10].mxu1 }
 0x483   :  { %1027 = vtanh.f32 %v438_v58  ;;  %v914_v61 = vpop.f32.mrb[11].mxu1 }
 0x48d   :  { %v1028_v62 = vpop.eup %1027 }
 0x48e   :  { %v442_v63 = vpack.c.bf16 %v1028_v62, %v1028_v62 }
 0x490   :  { %932 = vmatmul.mubr.bf16.vlgmr.msra.gmra.mrb[16].mxu0 %v442_v63 }
 0x491   :  { %956 = vmatpush3.bf16.msra.mxu0 %v1077_v1  ;;  %971 = vmatprep.mubr.msk.bf16.mxu0 %vm1036_vm0, %v1035_v0  ;;  %v134_v1 = vadd.f32 %v1195_v19, %v1222_v31 }
 0x492   :  { %957 = vmatprep.subr.bf16.mxu0 %v1035_v0 }
 0x495   :  { %958 = vmatpush3.bf16.msra.mxu0 %v1085_v2 }
 0x496   :  { %959 = vmatprep.subr.bf16.mxu0 %v1035_v0 }
 0x499   :  { %960 = vmatpush3.bf16.msra.mxu0 %v1091_v3 }
 0x49a   :  { %961 = vmatprep.subr.bf16.mxu0 %v1035_v0 }
 0x49d   :  { %962 = vmatpush3.bf16.msra.mxu0 %v1109_v7 }
 0x49e   :  { %963 = vmatprep.subr.bf16.mxu0 %v1035_v0 }
 0x4a1   :  { %964 = vmatpush3.bf16.msra.mxu0 %v1119_v8 }
 0x4a2   :  { %965 = vmatprep.subr.bf16.mxu0 %v1035_v0 }
 0x4a5   :  { %966 = vmatpush3.bf16.msra.mxu0 %v1128_v9  ;;  %v1011_v9 = vld [vmem:[%s1351_s4] sm:$0xff]  }
 0x4a6   :  { %967 = vmatprep.subr.bf16.mxu0 %v1035_v0 }
 0x4a9   :  { %968 = vmatpush3.bf16.msra.mxu0 %v1137_v10  ;;  %v1012_v10 = vld [vmem:[%s1351_s4 + $0x8] sm:$0xff]  }
 0x4aa   :  { %969 = vmatprep.subr.bf16.mxu0 %v1035_v0 }
 0x4ad   :  { %970 = vmatpush3.bf16.msra.mxu0 %v1146_v11  ;;  %v1013_v11 = vld [vmem:[%s1351_s4 + $0x10] sm:$0xff]  }
 0x563   :  { %v477_v2 = vpop.f32.mrb[16].mxu0 }
 0x564   :  { %v483_v3 = vadd.f32 %v477_v2, %v134_v1  ;;  %v933_v4 = vpop.f32.mrb[17].mxu0 }
 0x565   :  { %v480_v5 = vpop.f32.mrb[18].mxu0 }
 0x566   :  { %1029 = vtanh.f32 %v483_v3  ;;  %v934_v6 = vpop.f32.mrb[19].mxu0 }
 0x570   :  { %v1030_v7 = vpop.eup %1029 }
 0x571   :  { %v487_v8 = vpack.c.bf16 %v1030_v7, %v1030_v7 }
 0x573   :  { %952 = vmatmul.mubr.bf16.vlgmr.msra.gmra.mrb[12].mxu1 %v487_v8 }
 0x574   :  { %991 = vmatprep.mubr.msk.bf16.mxu1 %vm1036_vm0, %v1035_v0  ;;  %976 = vmatpush3.bf16.msra.mxu1 %v1011_v9 }
 0x575   :  { %977 = vmatprep.subr.bf16.mxu1 %v1035_v0 }
 0x578   :  { %978 = vmatpush3.bf16.msra.mxu1 %v1012_v10 }
 0x579   :  { %979 = vmatprep.subr.bf16.mxu1 %v1035_v0 }
 0x57c   :  { %980 = vmatpush3.bf16.msra.mxu1 %v1013_v11 }
 0x57d   :  { %981 = vmatprep.subr.bf16.mxu1 %v1035_v0 }
 0x580   :  { %982 = vmatpush3.bf16.msra.mxu1 %v1014_v12 }
 0x581   :  { %983 = vmatprep.subr.bf16.mxu1 %v1035_v0 }
 0x584   :  { %984 = vmatpush3.bf16.msra.mxu1 %v1015_v22 }
 0x585   :  { %985 = vmatprep.subr.bf16.mxu1 %v1035_v0 }
 0x588   :  { %986 = vmatpush3.bf16.msra.mxu1 %v1016_v23 }
 0x589   :  { %987 = vmatprep.subr.bf16.mxu1 %v1035_v0 }
 0x58c   :  { %988 = vmatpush3.bf16.msra.mxu1 %v1017_v24 }
 0x58d   :  { %989 = vmatprep.subr.bf16.mxu1 %v1035_v0  ;;  %v710_v0 = vld [vmem:[%s1352_s5] ss:$0 sm:$0xff] }
 0x590   :  { %990 = vmatpush3.bf16.msra.mxu1 %v1018_v25 }
 0x646   :  { %v522_v14 = vpop.f32.mrb[12].mxu1 }
 0x647   :  { %v528_v15 = vadd.f32 %v522_v14, %v139_v13  ;;  %v953_v16 = vpop.f32.mrb[13].mxu1 }
 0x648   :  { %v525_v17 = vpop.f32.mrb[14].mxu1 }
 0x649   :  { %1031 = vtanh.f32 %v528_v15  ;;  %v954_v18 = vpop.f32.mrb[15].mxu1 }
 0x653   :  { %v1032_v20 = vpop.eup %1031 }
 0x654   :  { %v532_v21 = vpack.c.bf16 %v1032_v20, %v1032_v20 }
 0x656   :  { %972 = vmatmul.mubr.bf16.vlgmr.msra.gmra.mrb[20].mxu0 %v532_v21 }
 0x729   :  { %v567_v27 = vpop.f32.mrb[20].mxu0 }
 0x72a   :  { %v573_v28 = vadd.f32 %v567_v27, %v142_v26  ;;  %v973_v29 = vpop.f32.mrb[21].mxu0 }
 0x72b   :  { %v570_v31 = vpop.f32.mrb[22].mxu0 }
 0x72c   :  { %1033 = vtanh.f32 %v573_v28  ;;  %v974_v32 = vpop.f32.mrb[23].mxu0 }
 0x736   :  { %v1034_v33 = vpop.eup %1033 }
 0x737   :  { %v575_v34 = vpack.c.bf16 %v1034_v33, %v1034_v33 }
 0x739   :  { %992 = vmatmul.mubr.bf16.vlgmr.msra.gmra.mrb[16].mxu1 %v575_v34 }
 0x80c   :  { %v681_v35 = vpop.f32.mrb[16].mxu1 }
 0x80d   :  { %v682_v36 = vadd.f32 %v710_v0, %v681_v35  ;;  %v993_v37 = vpop.f32.mrb[17].mxu1 }
 0x80e   :  { %v684_v38 = vpop.f32.mrb[18].mxu1 }
 0x80f   :  { %687 = vst [vmem:[%s1353_s6] sm:$0xff] %v682_v36  ;;  %v994_v19 = vpop.f32.mrb[19].mxu1 }

</bundles_post_ra>
